<compile_context>
chip_gen: v7x
topology: tpu7x:2x2x1
jax: 0.10.0
libtpu: 0.0.40
codegen_flags: <defaults>
</compile_context>

<pallas_src>
import functools

import jax
import jax.numpy as jnp
from jax.experimental import pallas as pl
from jax.experimental.pallas import tpu as pltpu

LANES = 128
CHUNK = 1024          # rows per fused compute/fold chunk inside a tile
MIN_STEPS = 8         # target minimum grid steps per core


def _cdiv(a, b):
    return (a + b - 1) // b


def _round_up(a, b):
    return _cdiv(a, b) * b


def _charbonnier_kernel(x_ref, y_ref, o_ref, *, eps2, tm, chunk, rows,
                        blocks_per_split):
    c = pl.program_id(0)   # TensorCore-split axis
    i = pl.program_id(1)   # reduction axis ("arbitrary"); output block resident

    @pl.when(i == 0)
    def _():
        o_ref[...] = jnp.zeros_like(o_ref)

    # Logical (unclamped) block index -> starting row of this tile.
    block_idx = c * blocks_per_split + i
    row0 = block_idx * tm

    nchunks = tm // chunk
    eps2_f = jnp.float32(eps2)

    def body(s, acc):
        off = pl.multiple_of(s * chunk, chunk)
        x = x_ref[pl.ds(off, chunk), :].astype(jnp.float32)
        y = y_ref[pl.ds(off, chunk), :].astype(jnp.float32)
        d = x - y
        val = jnp.sqrt(d * d + eps2_f)
        # Row mask: all-true for interior blocks (cheap VALU filler in an
        # HBM-bound kernel); zeroes padded tail rows and clamped overflow
        # blocks BEFORE anything is summed.
        local_row = jax.lax.broadcasted_iota(jnp.int32, val.shape, 0)
        keep = (row0 + off + local_row) < rows
        val = jnp.where(keep, val, jnp.float32(0.0))
        # (chunk,128) -> (chunk//8, 8, 128) is tile-aligned; summing the
        # leading axis is pure VPU adds -> per-lane partial sums (no XLU).
        return acc + jnp.sum(val.reshape(chunk // 8, 8, LANES), axis=0)

    acc = jax.lax.fori_loop(0, nchunks, body,
                            jnp.zeros((8, LANES), jnp.float32), unroll=True)
    o_ref[...] += acc


def charbonnier_loss(x, y, eps=1e-3):
    assert x.shape == y.shape, (x.shape, y.shape)
    n = int(x.size)
    eps2 = float(eps) * float(eps)

    xf = x.reshape(-1)
    yf = y.reshape(-1)

    # Fold the < 128-element tail with a tiny jnp expression so the bulk path
    # never needs a full-array pad/copy.
    n_lane = (n // LANES) * LANES
    if n_lane < n:
        dt = xf[n_lane:].astype(jnp.float32) - yf[n_lane:].astype(jnp.float32)
        tail_sum = jnp.sum(jnp.sqrt(dt * dt + jnp.float32(eps2)))
    else:
        tail_sum = jnp.float32(0.0)

    if n_lane == 0:
        return tail_sum / jnp.float32(n)

    rows = n_lane // LANES
    xb = (xf if n_lane == n else xf[:n_lane]).reshape(rows, LANES)
    yb = (yf if n_lane == n else yf[:n_lane]).reshape(rows, LANES)

    itemsize = jnp.dtype(x.dtype).itemsize
    packing = max(8, 32 // max(1, itemsize))   # f32:8  bf16:16  int8/fp8:32

    kind = jax.devices()[0].device_kind.lower()
    is_v7 = "v7" in kind
    tm_default = 8192                # 8 MiB/step f32 -> grid overhead ~3%
    nsplit = 2 if is_v7 else 1       # v7x has 2 TensorCores per chip

    # Adaptive tile height: keep >= MIN_STEPS grid steps per core so the
    # BlockSpec double-buffer pipeline has something to overlap; round to the
    # dtype sublane packing (small inputs) or to CHUNK (large inputs).
    target = _cdiv(rows, nsplit * MIN_STEPS)
    if target >= CHUNK:
        tm = min(tm_default, _round_up(target, CHUNK))
        chunk = CHUNK
    else:
        tm = max(packing, _round_up(target, packing))
        chunk = tm

    total_blocks = _cdiv(rows, tm)
    if total_blocks < MIN_STEPS:
        # Too little work to split across TensorCores (avoids wasted re-DMA of
        # clamped overflow blocks on small inputs).
        nsplit = 1
    blocks_per_split = _cdiv(total_blocks, nsplit)
    last_block = total_blocks - 1

    def in_map(c, i):
        # Overflow blocks (past the end of the data) are clamped to the last
        # real block; the kernel's row mask zeroes their contribution.
        return (jnp.minimum(c * blocks_per_split + i, last_block), 0)

    # VMEM budget: double-buffered (x, y) tiles at the input dtype + slack for
    # the small per-chunk temporaries; capped well under v7x's 64 MiB.
    in_bytes = tm * LANES * 2 * itemsize
    vmem_limit = min(max(2 * in_bytes + (8 << 20), 32 << 20), 48 << 20)

    if nsplit > 1 and hasattr(pltpu, "CORE_PARALLEL"):
        dim_sems = (pltpu.CORE_PARALLEL, pltpu.ARBITRARY)
    else:
        dim_sems = ("parallel", "arbitrary")

    kernel = functools.partial(
        _charbonnier_kernel, eps2=eps2, tm=tm, chunk=chunk, rows=rows,
        blocks_per_split=blocks_per_split)

    cost = pl.CostEstimate(
        flops=5 * n,
        transcendentals=n,
        bytes_accessed=2 * n * itemsize + nsplit * 8 * LANES * 4)

    partials = pl.pallas_call(
        kernel,
        out_shape=jax.ShapeDtypeStruct((nsplit * 8, LANES), jnp.float32),
        grid_spec=pltpu.PrefetchScalarGridSpec(
            num_scalar_prefetch=0,
            grid=(nsplit, blocks_per_split),
            in_specs=[
                pl.BlockSpec((tm, LANES), in_map),
                pl.BlockSpec((tm, LANES), in_map),
            ],
            out_specs=pl.BlockSpec((8, LANES), lambda c, i: (c, 0)),
        ),
        compiler_params=pltpu.CompilerParams(
            dimension_semantics=dim_sems,
            vmem_limit_bytes=vmem_limit,
        ),
        cost_estimate=cost,
    )(xb, yb)

    return (jnp.sum(partials) + tail_sum) / jnp.float32(n)


if __name__ == "__main__":
    key = jax.random.PRNGKey(0)
    kx, ky = jax.random.split(key)
    x = jax.random.normal(kx, (2, 4, 16, 16), dtype=jnp.float32)  # NCHW
    y = jax.random.normal(ky, (2, 4, 16, 16), dtype=jnp.float32)

    loss = charbonnier_loss(x, y, eps=1e-3)
    loss = jax.block_until_ready(loss)

    # Pure-JAX reference check.
    diff = x - y
    ref = jnp.mean(jnp.sqrt(diff * diff + 1e-3 * 1e-3))
    assert jnp.allclose(loss, ref, rtol=1e-5, atol=1e-6), (loss, ref)

    print("KERNEL_OK")
</pallas_src>

<mosaic_0001>
module attributes {stable_mosaic.version = 11 : i64} {
  func.func @_charbonnier_kernel(%arg0: i32, %arg1: i32, %arg2: memref<8x128xf32, #tpu.memory_space<vmem>>, %arg3: memref<8x128xf32, #tpu.memory_space<vmem>>, %arg4: memref<8x128xf32, #tpu.memory_space<vmem>>) attributes {dimension_semantics = [#tpu.dimension_semantics<parallel>, #tpu.dimension_semantics<arbitrary>], iteration_bounds = array<i64: 1, 2>, scalar_prefetch = 0 : i64, scratch_operands = 0 : i64, tpu.core_type = #tpu.core_type<tc>, window_params = [{transform_indices = @transform_0, window_bounds = array<i64: 8, 128>}, {transform_indices = @transform_1, window_bounds = array<i64: 8, 128>}, {transform_indices = @transform_2, window_bounds = array<i64: 8, 128>}]} {
    %c0_i32 = arith.constant 0 : i32
    %0 = arith.cmpi eq, %arg1, %c0_i32 : i32
    %1 = arith.extui %0 : i1 to i32
    %c0_i32_0 = arith.constant 0 : i32
    %2 = arith.cmpi ne, %1, %c0_i32_0 : i32
    scf.if %2 {
      %cst_11 = arith.constant 0.000000e+00 : f32
      %32 = vector.broadcast %cst_11 : f32 to vector<8x128xf32>
      %c0_12 = arith.constant 0 : index
      %c0_13 = arith.constant 0 : index
      %33 = vector.load %arg4[%c0_12, %c0_13] : memref<8x128xf32, #tpu.memory_space<vmem>>, vector<8x128xf32>
      tpu.vector_store %arg4[%c0_12, %c0_13], %32 {strides = array<i32>} : memref<8x128xf32, #tpu.memory_space<vmem>>, vector<8x128xf32>,
    } else {
    }
    %c2_i32 = arith.constant 2 : i32
    %3 = arith.muli %arg0, %c2_i32 : i32
    %4 = arith.addi %3, %arg1 : i32
    %c8_i32 = arith.constant 8 : i32
    %5 = arith.muli %4, %c8_i32 : i32
    %cst = arith.constant 0.000000e+00 : f32
    %6 = vector.broadcast %cst : f32 to vector<8x128xf32>
    %cst_1 = arith.constant 9.99999997E-7 : f32
    %c0_i32_2 = arith.constant 0 : i32
    %c8_i32_3 = arith.constant 8 : i32
    %7 = arith.muli %c0_i32_2, %c8_i32_3 : i32
    %8 = tpu.assume_multiple %7, 8 : i32
    %9 = arith.index_cast %8 : i32 to index
    %c0 = arith.constant 0 : index
    %10 = vector.load %arg2[%9, %c0] : memref<8x128xf32, #tpu.memory_space<vmem>>, vector<8x128xf32>
    %11 = arith.index_cast %8 : i32 to index
    %c0_4 = arith.constant 0 : index
    %12 = vector.load %arg3[%11, %c0_4] : memref<8x128xf32, #tpu.memory_space<vmem>>, vector<8x128xf32>
    %13 = arith.subf %10, %12 : vector<8x128xf32>
    %14 = arith.mulf %13, %13 : vector<8x128xf32>
    %15 = vector.broadcast %cst_1 : f32 to vector<8x128xf32>
    %16 = arith.addf %14, %15 : vector<8x128xf32>
    %17 = math.sqrt %16 : vector<8x128xf32>
    %18 = tpu.iota {dimensions = array<i32: 0>} : vector<8x128xi32>
    %19 = arith.addi %5, %8 : i32
    %20 = vector.broadcast %19 : i32 to vector<8x128xi32>
    %21 = arith.addi %20, %18 : vector<8x128xi32>
    %c16_i32 = arith.constant 16 : i32
    %22 = vector.broadcast %c16_i32 : i32 to vector<8x128xi32>
    %23 = arith.cmpi slt, %21, %22 : vector<8x128xi32>
    %cst_5 = arith.constant 0.000000e+00 : f32
    %24 = vector.broadcast %cst_5 : f32 to vector<8x128xf32>
    %25 = arith.select %23, %17, %24 : vector<8x128xi1>, vector<8x128xf32>
    %26 = vector.shape_cast %25 : vector<8x128xf32> to vector<1x8x128xf32>
    %cst_6 = arith.constant dense<0.000000e+00> : vector<8x128xf32>
    %27 = vector.multi_reduction <add>, %26, %cst_6 [0] : vector<1x8x128xf32> to vector<8x128xf32>
    %28 = arith.addf %6, %27 : vector<8x128xf32>
    %c1_i32 = arith.constant 1 : i32
    %c0_7 = arith.constant 0 : index
    %c0_8 = arith.constant 0 : index
    %29 = vector.load %arg4[%c0_7, %c0_8] : memref<8x128xf32, #tpu.memory_space<vmem>>, vector<8x128xf32>
    %30 = arith.addf %29, %28 : vector<8x128xf32>
    %c0_9 = arith.constant 0 : index
    %c0_10 = arith.constant 0 : index
    %31 = vector.load %arg4[%c0_9, %c0_10] : memref<8x128xf32, #tpu.memory_space<vmem>>, vector<8x128xf32>
    tpu.vector_store %arg4[%c0_9, %c0_10], %30 {strides = array<i32>} : memref<8x128xf32, #tpu.memory_space<vmem>>, vector<8x128xf32>,
    return
  }
  func.func @transform_0(%arg0: i32, %arg1: i32) -> (i32, i32) {
    %c2_i32 = arith.constant 2 : i32
    %0 = arith.muli %arg0, %c2_i32 : i32
    %1 = arith.addi %0, %arg1 : i32
    %c1_i32 = arith.constant 1 : i32
    %2 = arith.minsi %1, %c1_i32 : i32
    %c0_i32 = arith.constant 0 : i32
    %c0_i32_0 = arith.constant 0 : i32
    return %2, %c0_i32 : i32, i32
  }
  func.func @transform_1(%arg0: i32, %arg1: i32) -> (i32, i32) {
    %c2_i32 = arith.constant 2 : i32
    %0 = arith.muli %arg0, %c2_i32 : i32
    %1 = arith.addi %0, %arg1 : i32
    %c1_i32 = arith.constant 1 : i32
    %2 = arith.minsi %1, %c1_i32 : i32
    %c0_i32 = arith.constant 0 : i32
    %c0_i32_0 = arith.constant 0 : i32
    return %2, %c0_i32 : i32, i32
  }
  func.func @transform_2(%arg0: i32, %arg1: i32) -> (i32, i32) {
    %c0_i32 = arith.constant 0 : i32
    %c0_i32_0 = arith.constant 0 : i32
    return %arg0, %c0_i32 : i32, i32
  }
}

</mosaic_0001>

<bundles_post_ra>
// kernel: tpu_custom_call.1
= control target key start
LH: loop header
LB: loop body
LE: loop exit
PB: predicated region body
PF: predicated region fallthrough
CT: control target
= control target key end

     0   :  { %7 = vsyncpa [#allocation3], 0  ;;  %s807_s0 = inlined_call_operand.hbm [shape: f32[16,128], index: 0, kind: input, shape index: {}]   ;;  %s808_s1 = inlined_call_operand.hbm [shape: f32[16,128], index: 1, kind: input, shape index: {}]   ;;  %s809_s2 = inlined_call_operand.hbm [shape: f32[8,128], index: 2, kind: output, shape index: {}]  }
   0x1   :  { %9 = vsyncpa [#allocation3 + $0x1], 0 }
   0x2   :  { %10 = vsyncpa [#allocation6], 0 }
   0x3   :  { %12 = vsyncpa [#allocation6 + $0x1], 0 }
   0x4   :  { %13 = vsyncpa [#allocation4], 0  ;;  %s609_s9 = smov 0   ;;  %s611_s10 = smov 0  }
   0x5   :  { %s613_s11 = smov 0   ;;  %s615_s12 = smov 0  }
   0x6   :  { %s617_s13 = smov 0   ;;  %s619_s14 = smov 0  }
   0x7 LB: > { %s358_s15 = sadd.s32 4294967295, %s588_s14   ;;  %s28_s16 = sadd.s32 1, %s584_s13  ;;  %s588_s14 = sphi %s619_s14, %s19_s14   ;;  %s584_s13 = sphi %s617_s13, %s823_s13   ;;  %s580_s12 = sphi %s615_s12, %s822_s12   ;;  %s576_s11 = sphi %s613_s11, %s821_s11   ;;  %s572_s10 = sphi %s611_s10, %s820_s10   ;;  %s568_s9 = sphi %s609_s9, %s819_s9  }
   0x8   : > { %p29_p0 = scmp.ge.s32.totalorder %s28_s16, 2  ;;  %p37_p1 = scmp.lt.s32.totalorder %s584_s13, 1 }
   0x9   : > { %s46_s17 = sadd.s32 1, %s576_s11  ;;  %p53_p2 = scmp.ne.s32.totalorder %s576_s11, %s572_s10 }
   0xa   : > { %s825_s16 = smov (%p29_p0, %s28_s16), 0  ;;  %p54_p4 = scmp.eq.s32.totalorder %s588_s14, 0 }
   0xb   : > { %s646_s18 = scalar_select %p37_p1, %s584_s13, 1 }
   0xc   : > { %p41_p3 = scmp.lt.s32.totalorder %s825_s16, 1  ;;  %p59_p5 = scmp.ne.s32.totalorder %s572_s10, %s568_s9 }
   0xd   : > { %p60_p6 = scmp.eq.s32.totalorder %s358_s15, 0  ;;  %p55_p7 = por %p54_p4, %p53_p2 }
   0xe   : > { %s42_s19 = scalar_select %p41_p3, %s825_s16, 1 }
   0xf   : > { %p654_p8 = por %p60_p6, %p59_p5  ;;  %p389_p10 = scmp.lt.s32.totalorder %s588_s14, 2 }
  0x10   : > { %s43_s21 = ssub.s32 %s646_s18, %s42_s19  ;;  %s661_s22 = sand.u32 1, %s576_s11  }
  0x11   : > { %s811_s20 = scalar_select %p654_p8, 1, 0 }
  0x12   : > { %p44_p9 = scmp.eq.s32.totalorder %s43_s21, 0  ;;  %s362_s23 = sshll.u32 %s646_s18, 7 }
  0x13   : > { %s361_s25 = sshll.u32 %s661_s22, 3  ;;  %s673_s28 = scalar_lea.hbm %s807_s0, %s362_s23 }
  0x14   : > { %s665_s24 = scalar_select %p44_p9, %s576_s11, %s46_s17  }
  0x15   : > { %s147_s29 = scalar_lea.vmem [#allocation2], %s361_s25  ;;  %p677_p11 = pnand %p389_p10, %p55_p7 }
  0x16   : > { %s158_s30 = sshll.u32 %s147_s29, 4  ;;  %s144_s4 = scalar_lea.sflag [#allocation3], %s661_s22  ;;  %s681_s30 = int_to_ptr.vmem [resolvable:$true] %s158_s30 }
  0x17   : > { %s444_s5 = scalar_lea.hbm %s673_s28, 128  ;;  %p446_p1 = pneg %p677_p11 }
  0x18   : > { %p445_p0 = scmp.ne.s32.totalorder %s673_s28, %s444_s5  ;;  %s449_s8 = scalar_lea.hbm %s807_s0, 256 }
  0x19   : > { %p450_p4 = scmp.lt.u32.totalorder %s673_s28, %s807_s0  ;;  %p451_p5 = scmp.lt.u32.totalorder %s449_s8, %s444_s5 }
  0x1a   : > { %p447_p2 = pnand %p446_p1, %p445_p0  ;;  %p453_p7 = scmp.lt.u32.totalorder %s444_s5, %s673_s28 }
  0x1b   : > { %p452_p6 = por %p451_p5, %p450_p4 }
  0x1c   : > { %p448_p3 = pneg %p447_p2 }
  0x1d   : > { %p454_p9 = por %p453_p7, %p452_p6 }
  0x1f   : > { %p455_p10 = pnand %p454_p9, %p448_p3 }
  0x21   : > { %458 = shalt.err (!%p455_p10)
}
  0x22   : > { %s459_s19 = scalar_lea.vmem %s681_s30, 128  ;;  %s590_s21 = smov [#allocation2]  }
  0x23   : > { %p460_p0 = scmp.ne.s32.totalorder %s681_s30, %s459_s19  ;;  %s464_s26 = sshll.u32 %s590_s21, 4  ;;  %s465_s26 = int_to_ptr.vmem [resolvable:$false] %s464_s26 }
  0x24   : > { %s466_s27 = scalar_lea.vmem %s465_s26, 256  ;;  %p467_p13 = scmp.lt.s32.totalorder %s681_s30, %s465_s26 }
  0x25   : > { %p462_p2 = pnand %p460_p0, %p446_p1  ;;  %p468_p4 = scmp.lt.s32.totalorder %s466_s27, %s459_s19 }
  0x27   : > { %p463_p12 = pneg %p462_p2  ;;  %p469_p5 = por %p468_p4, %p467_p13 }
  0x29   : > { %p470_p6 = pnand %p469_p5, %p463_p12 }
  0x2b   : > { %473 = shalt.err (!%p470_p6)
}
  0x2c   : > { %385 = dma.hbm_to_vmem [thread:$0]  (!%p677_p11), %s673_s28, 128, %s681_s30, %s144_s4  }
  0x2d   : > { %p813_p3 = scmp.lt.s32.totalorder %s588_s14, 3  ;;  %p814_p7 = scmp.ge.s32.totalorder %s588_s14, 1 }
  0x2e   : > { %s724_s7 = scalar_lea.hbm %s808_s1, %s362_s23  ;;  %s169_s8 = scalar_lea.vmem [#allocation5], %s361_s25 }
  0x2f   : > { %p715_p9 = pnand %p814_p7, %p813_p3  ;;  %s180_s9 = sshll.u32 %s169_s8, 4  ;;  %s181_s9 = int_to_ptr.vmem [resolvable:$true] %s180_s9 }
  0x30   : > { %s166_s28 = scalar_lea.sflag [#allocation6], %s661_s22  ;;  %s474_s30 = scalar_lea.hbm %s724_s7, 128 }
  0x31   : > { %s815_s29 = scalar_select %p715_p9, 1, 0 }
  0x32   : > { %p475_p12 = scmp.ne.s32.totalorder %s724_s7, %s474_s30  ;;  %s479_s23 = scalar_lea.hbm %s808_s1, 256 }
  0x33   : > { %p480_p0 = scmp.lt.u32.totalorder %s724_s7, %s808_s1  ;;  %p481_p2 = scmp.lt.u32.totalorder %s479_s23, %s474_s30 }
  0x34   : > { %p477_p13 = pnand %p475_p12, %p446_p1  ;;  %p483_p5 = scmp.lt.u32.totalorder %s474_s30, %s724_s7 }
  0x35   : > { %p482_p4 = por %p481_p2, %p480_p0 }
  0x36   : > { %p478_p10 = pneg %p477_p13 }
  0x37   : > { %p484_p6 = por %p483_p5, %p482_p4 }
  0x39   : > { %p485_p3 = pnand %p484_p6, %p478_p10 }
  0x3b   : > { %488 = shalt.err (!%p485_p3)
}
  0x3c   : > { %s489_s22 = scalar_lea.vmem %s181_s9, 128  ;;  %s591_s25 = smov [#allocation5]  }
  0x3d   : > { %p490_p7 = scmp.ne.s32.totalorder %s181_s9, %s489_s22  ;;  %s494_s21 = sshll.u32 %s591_s25, 4  ;;  %s495_s21 = int_to_ptr.vmem [resolvable:$false] %s494_s21 }
  0x3e   : > { %s496_s26 = scalar_lea.vmem %s495_s21, 256  ;;  %p497_p8 = scmp.lt.s32.totalorder %s181_s9, %s495_s21 }
  0x3f   : > { %p492_p12 = pnand %p490_p7, %p446_p1  ;;  %p498_p9 = scmp.lt.s32.totalorder %s496_s26, %s489_s22 }
  0x41   : > { %p493_p13 = pneg %p492_p12  ;;  %p499_p0 = por %p498_p9, %p497_p8 }
  0x43   : > { %p500_p2 = pnand %p499_p0, %p493_p13 }
  0x45   : > { %503 = shalt.err (!%p500_p2)
}
  0x46   : > { %388 = dma.hbm_to_vmem [thread:$0]  (!%p677_p11), %s724_s7, 128, %s181_s9, %s166_s28  }
  0x47   : > { %p816_p10 = scmp.ne.s32.totalorder %s815_s29, 0 }
  0x48   : > { %s191_s27 = sand.u32 (!%p816_p10), 1, %s572_s10   ;;  %p817_p1 = scmp.ne.s32.totalorder (!%p816_p10), %s811_s20, 0 }
  0x49   : > { %189 = sbr.rel (%p816_p10) target bundleno = 132 (0x84), region = 28  ;;  %s366_s5 = sshll.u32 (!%p816_p10), %s191_s27, 3 }
  0x4a   : > { %s192_s6 = scalar_lea.sflag (!%p816_p10), [#allocation3], %s191_s27  ;;  %s195_s8 = scalar_lea.vmem (!%p816_p10), [#allocation2], %s366_s5 }
  0x50   : > { %555 = dma.done.wait (%p817_p1), %s192_s6, 128  }
  0x51   : > { %557 = vsyncadd (%p817_p1), %s192_s6, 4294967168  ;;  %s201_s30 = scalar_lea.sflag [#allocation6], %s191_s27  ;;  %s204_s18 = scalar_lea.vmem [#allocation5], %s366_s5 }
  0x52   : > { %559 = dma.done.wait (%p817_p1), %s201_s30, 128  }
  0x53   : > { %561 = vsyncadd (%p817_p1), %s201_s30, 4294967168  ;;  %p368_p8 = scmp.ne.s32.totalorder %s580_s12, 0 }
  0x54   : > { %v592_v0 = vmov (!%p368_p8), 0.0  }
  0x55   : > { %236 = sbr.rel (%p368_p8) target bundleno = 92 (0x5c), region = 40  ;;  %237 = vst [vmem:[#allocation7] sm:$0xff] (!%p368_p8), %v592_v0 }
  0x5c PF: > { %v241_v1 = vld [vmem:[%s195_s8] sm:$0xff]  ;;  %v242_v2 = vld [vmem:[%s204_s18] sm:$0xff]  ;;  %v253_v6 = vlaneseq  ;;  %s369_s3 = sshll.u32 %s580_s12, 3  ;;  %s593_s20 = smov [#allocation7]  }
  0x5d   : > { %v243_v3 = vsub.f32 %v241_v1, %v242_v2  ;;  %v256_v8 = vstv %s369_s3  ;;  %v262_v14 = vld [vmem:[#allocation7] sm:$0xff]  ;;  %s274_s29 = sshll.u32 %s593_s20, 4  ;;  %p763_p11 = scmp.eq.s32.totalorder %s358_s15, 1  ;;  %s275_s29 = int_to_ptr.vmem [resolvable:$true] %s274_s29 }
  0x5e   : > { %v254_v7 = vshrl.u32 %v253_v6, 7  ;;  %s504_s12 = scalar_lea.vmem %s275_s29, 128  ;;  %p511_p6 = scmp.lt.s32.totalorder %s275_s29, %s275_s29 }
  0x5f   : > { %v244_v4 = vmul.f32 %v243_v3, %v243_v3  ;;  %p505_p9 = scmp.ne.s32.totalorder %s275_s29, %s504_s12  ;;  %p512_p3 = scmp.lt.s32.totalorder %s504_s12, %s504_s12 }
  0x60   : > { %v257_v9 = vadd.s32 %v256_v8, %v254_v7 }
  0x61   : > { %v245_v5 = vadd.f32 1e-06, %v244_v4  ;;  %p506_p4 = pnand %p505_p9, %p763_p11  ;;  %p513_p7 = por %p512_p3, %p511_p6 }
  0x62   : > { %vm258_vm2 = vcmp.lt.s32.totalorder %v257_v9, 16 }
  0x63   : > { %442 = vrsqrt.f32 %v245_v5  ;;  %vm248_vm0 = vcmp.eq.f32.partialorder %v245_v5, inf  ;;  %v251_v11 = vand.u32 2147483648, %v245_v5  ;;  %vm250_vm1 = vcmp.eq.f32.partialorder %v245_v5, 0.0  ;;  %p507_p5 = pneg %p506_p4 }
  0x65   : > { %p514_p12 = pnand %p513_p7, %p507_p5 }
  0x6d   : > { %v443_v10 = vpop.eup %442 }
  0x6e   : > { %v247_v12 = vmul.f32 %v443_v10, %v245_v5 }
  0x70   : > { %v249_v13 = vsel %vm248_vm0, %v245_v5, %v247_v12 }
  0x71   : > { %v252_v15 = vsel %vm250_vm1, %v251_v11, %v249_v13 }
  0x72   : > { %v259_v16 = vsel %vm258_vm2, %v252_v15, 0.0 }
  0x73   : > { %v263_v17 = vadd.f32 %v262_v14, %v259_v16 }
  0x75   : > { %264 = vst [vmem:[#allocation7] sm:$0xff] %v263_v17 }
  0x76   : > { %517 = shalt.err (!%p514_p12)
}
  0x77   : > { %s518_s15 = scalar_lea.hbm %s809_s2, 128 }
  0x78   : > { %p519_p13 = scmp.ne.s32.totalorder %s809_s2, %s518_s15  ;;  %p524_p10 = scmp.lt.u32.totalorder %s518_s15, %s809_s2 }
  0x7a   : > { %p520_p0 = pnand %p519_p13, %p763_p11 }
  0x7c   : > { %p521_p2 = pneg %p520_p0 }
  0x7e   : > { %p526_p1 = pnand %p524_p10, %p521_p2 }
  0x80   : > { %529 = shalt.err (!%p526_p1)
}
  0x81   : > { %379 = dma.vmem_to_hbm [thread:$0]  (%p763_p11), %s275_s29, 128, %s809_s2, [#allocation4]  }
  0x82   : > { %563 = dma.done.wait (%p763_p11), [#allocation4], 128  }
  0x83   : > { %565 = vsyncadd (%p763_p11), [#allocation4], 4294967168 }
  0x84 PF: > { %s19_s14 = sadd.s32 1, %s588_s14   ;;  %s819_s9 = smov %s572_s10 }
  0x85   : > { %p16_p8 = scmp.ge.s32.totalorder %s19_s14, 4   ;;  %s820_s10 = smov %s576_s11 }
  0x86   : > { %s821_s11 = smov %s665_s24  ;;  %s822_s12 = smov %s584_s13 }
  0x87   : > { %s823_s13 = smov %s825_s16  ;;  %18 = sbr.rel (!%p16_p8) target bundleno = 7 (0x7), region = 83 }
  0x8e   :  { %287 = vsyncpa [#allocation3], 1 }
  0x8f   :  { %289 = vsyncpa [#allocation3 + $0x1], 1 }
  0x90   :  { %290 = vsyncpa [#allocation6], 1 }
  0x91   :  { %292 = vsyncpa [#allocation6 + $0x1], 1 }
  0x92   :  { %293 = vsyncpa [#allocation4], 1 }
  0x93   :  { %295 = vsyncpa [#allocation4 + $0x1], 1 }

</bundles_post_ra>
